<compile_context>
chip_gen: v5e
topology: v5e:2x2
jax: 0.10.0
libtpu: 0.0.40
codegen_flags: <defaults>
</compile_context>

<pallas_src>
import jax
import jax.numpy as jnp
from jax.experimental import pallas as pl
from jax.experimental.pallas import tpu as pltpu


def roberts_gradient(img, *, rep_tile_budget_bytes=4 * 1024 * 1024):
    """Pallas implementation of RobertsGradientKernel.forward (length=False, normalize=False)."""
    img = img.astype(jnp.float32)
    N, C, H, W = img.shape
    HW = H * W

    # Replicate-channel tile: a divisor of N whose (rep_tile, HW) f32 slab stays small,
    # so double-buffered output blocks never blow VMEM (important on v7x's 64 MiB).
    cap = max(1, rep_tile_budget_bytes // (HW * 4))
    rep_tile = min(N, cap)
    while N % rep_tile:
        rep_tile -= 1
    n_rep_tiles = (2 * N) // rep_tile        # grid steps along the replicated-channel axis
    half_tiles = N // rep_tile               # tiles [0, half_tiles) -> horizontal, rest -> vertical

    x = img.reshape(N, C, HW)                # lane-dense last dim

    def kernel(x_ref, o_ref):
        # x_ref: (C, HW) block of batch element n; o_ref: (rep_tile, HW) output slab.
        xb = x_ref[...]
        if C >= 128:
            # Large channel counts: do the channel reduction on the (otherwise idle) MXU.
            s = jnp.dot(jnp.ones((1, C), jnp.float32), xb,
                        preferred_element_type=jnp.float32)          # (1, HW)
        else:
            s = jnp.sum(xb, axis=0, keepdims=True)                   # (1, HW)

        # Zero-padded 2x2 shifts via XLU rolls + iota masks (no concatenate copies).
        idx = jax.lax.broadcasted_iota(jnp.int32, (1, HW), 1)
        col_ok = (idx % W) != (W - 1)        # not the last column of a row
        row_ok = idx < (HW - W)              # not the last row
        zero = jnp.zeros_like(s)
        s_right = jnp.where(col_ok, pltpu.roll(s, HW - 1, axis=1), zero)       # s[y, x+1]
        s_down = jnp.where(row_ok, pltpu.roll(s, HW - W, axis=1), zero)        # s[y+1, x]
        s_diag = jnp.where(row_ok, pltpu.roll(s_right, HW - W, axis=1), zero)  # s[y+1, x+1]

        # kernel_h = [[1,0],[0,-1]] -> s[y,x]   - s[y+1,x+1]
        # kernel_v = [[0,1],[-1,0]] -> s[y,x+1] - s[y+1,x];  the final /2 is folded in.
        h = (s - s_diag) * 0.5
        v = (s_right - s_down) * 0.5

        r = pl.program_id(1)

        @pl.when(r < half_tiles)
        def _():
            o_ref[...] = jnp.broadcast_to(h, (rep_tile, HW))

        @pl.when(r >= half_tiles)
        def _():
            o_ref[...] = jnp.broadcast_to(v, (rep_tile, HW))

    out = pl.pallas_call(
        kernel,
        out_shape=jax.ShapeDtypeStruct((N, n_rep_tiles, rep_tile, HW), jnp.float32),
        grid=(N, n_rep_tiles),
        in_specs=[pl.BlockSpec((None, C, HW), lambda n, r: (n, 0, 0))],
        out_specs=pl.BlockSpec((None, None, rep_tile, HW), lambda n, r: (n, r, 0, 0)),
        compiler_params=pltpu.CompilerParams(
            dimension_semantics=("parallel", "parallel"),
            vmem_limit_bytes=32 * 1024 * 1024,
        ),
    )(x)
    # TODO(synk): for very large H*W the spatial axis should also be tiled (needs a 1-row halo).
    return out.reshape(N, 2 * N, H, W)


def roberts_reference(img):
    """Pure-JAX reference mirroring the PyTorch module exactly."""
    img = img.astype(jnp.float32)
    N, C, H, W = img.shape
    s = jnp.sum(img, axis=1)                               # (N, H, W)
    sp = jnp.pad(s, ((0, 0), (0, 1), (0, 1)))              # pad bottom/right with 0
    h = sp[:, :H, :W] - sp[:, 1:, 1:]
    v = sp[:, :H, 1:] - sp[:, 1:, :W]
    h = jnp.repeat(h[:, None], N, axis=1)                  # conv weight expanded over batch dim
    v = jnp.repeat(v[:, None], N, axis=1)
    return jnp.concatenate([h, v], axis=1) / 2.0


if __name__ == "__main__":
    key = jax.random.PRNGKey(0)
    img = jax.random.normal(key, (2, 4, 16, 16), dtype=jnp.float32)

    out = roberts_gradient(img)
    out = jax.block_until_ready(out)

    ref = roberts_reference(img)
    assert out.shape == (2, 4, 16, 16), out.shape
    assert out.dtype == jnp.float32
    assert jnp.allclose(out, ref, atol=1e-5, rtol=1e-5), "mismatch vs reference"

    print("KERNEL_OK")
</pallas_src>

<mosaic_0001>
module attributes {stable_mosaic.version = 11 : i64} {
  func.func @kernel(%arg0: i32, %arg1: i32, %arg2: memref<1x4x256xf32, #tpu.memory_space<vmem>>, %arg3: memref<1x1x2x256xf32, #tpu.memory_space<vmem>>) attributes {dimension_semantics = [#tpu.dimension_semantics<parallel>, #tpu.dimension_semantics<parallel>], iteration_bounds = array<i64: 2, 2>, scalar_prefetch = 0 : i64, scratch_operands = 0 : i64, tpu.core_type = #tpu.core_type<tc>, window_params = [{transform_indices = @transform_0, window_bounds = array<i64: 1, 4, 256>}, {transform_indices = @transform_1, window_bounds = array<i64: 1, 1, 2, 256>}]} {
    %c0 = arith.constant 0 : index
    %c0_0 = arith.constant 0 : index
    %c0_1 = arith.constant 0 : index
    %0 = vector.load %arg2[%c0, %c0_0, %c0_1] : memref<1x4x256xf32, #tpu.memory_space<vmem>>, vector<1x4x256xf32>
    %1 = vector.shape_cast %0 : vector<1x4x256xf32> to vector<4x256xf32>
    %cst = arith.constant dense<0.000000e+00> : vector<256xf32>
    %2 = vector.multi_reduction <add>, %1, %cst [0] : vector<4x256xf32> to vector<256xf32>
    %3 = vector.shape_cast %2 : vector<256xf32> to vector<1x256xf32>
    %4 = tpu.iota {dimensions = array<i32: 1>} : vector<1x256xi32>
    %c16_i32 = arith.constant 16 : i32
    %c0_i32 = arith.constant 0 : i32
    %5 = arith.cmpi eq, %c16_i32, %c0_i32 : i32
    %c1_i32 = arith.constant 1 : i32
    %6 = arith.select %5, %c1_i32, %c16_i32 : i32
    %7 = vector.broadcast %6 : i32 to vector<1x256xi32>
    %8 = arith.remsi %4, %7 : vector<1x256xi32>
    %c0_i32_2 = arith.constant 0 : i32
    %9 = vector.broadcast %c0_i32_2 : i32 to vector<1x256xi32>
    %10 = arith.cmpi ne, %8, %9 : vector<1x256xi32>
    %c0_i32_3 = arith.constant 0 : i32
    %11 = vector.broadcast %c0_i32_3 : i32 to vector<1x256xi32>
    %12 = arith.cmpi slt, %8, %11 : vector<1x256xi32>
    %c0_i32_4 = arith.constant 0 : i32
    %13 = arith.cmpi slt, %6, %c0_i32_4 : i32
    %14 = vector.broadcast %13 : i1 to vector<1x256xi1>
    %15 = vector.broadcast %14 : vector<1x256xi1> to vector<1x256xi1>
    %16 = arith.xori %12, %15 : vector<1x256xi1>
    %17 = arith.andi %16, %10 : vector<1x256xi1>
    %18 = vector.broadcast %6 : i32 to vector<1x256xi32>
    %19 = arith.addi %8, %18 : vector<1x256xi32>
    %20 = arith.select %17, %19, %8 : vector<1x256xi1>, vector<1x256xi32>
    %c15_i32 = arith.constant 15 : i32
    %21 = vector.broadcast %c15_i32 : i32 to vector<1x256xi32>
    %22 = arith.cmpi ne, %20, %21 : vector<1x256xi32>
    %c240_i32 = arith.constant 240 : i32
    %23 = vector.broadcast %c240_i32 : i32 to vector<1x256xi32>
    %24 = arith.cmpi slt, %4, %23 : vector<1x256xi32>
    %cst_5 = arith.constant 0.000000e+00 : f32
    %25 = vector.broadcast %cst_5 : f32 to vector<1x256xf32>
    %c255_i32 = arith.constant 255 : i32
    %26 = tpu.dynamic_rotate %3 by %c255_i32 dim 1 : vector<1x256xf32>, i32 -> vector<1x256xf32>
    %27 = arith.select %22, %26, %25 : vector<1x256xi1>, vector<1x256xf32>
    %c240_i32_6 = arith.constant 240 : i32
    %28 = tpu.dynamic_rotate %3 by %c240_i32_6 dim 1 : vector<1x256xf32>, i32 -> vector<1x256xf32>
    %29 = arith.select %24, %28, %25 : vector<1x256xi1>, vector<1x256xf32>
    %c240_i32_7 = arith.constant 240 : i32
    %30 = tpu.dynamic_rotate %27 by %c240_i32_7 dim 1 : vector<1x256xf32>, i32 -> vector<1x256xf32>
    %31 = arith.select %24, %30, %25 : vector<1x256xi1>, vector<1x256xf32>
    %32 = arith.subf %3, %31 : vector<1x256xf32>
    %cst_8 = arith.constant 5.000000e-01 : f32
    %33 = vector.broadcast %cst_8 : f32 to vector<1x256xf32>
    %34 = arith.mulf %32, %33 : vector<1x256xf32>
    %35 = arith.subf %27, %29 : vector<1x256xf32>
    %cst_9 = arith.constant 5.000000e-01 : f32
    %36 = vector.broadcast %cst_9 : f32 to vector<1x256xf32>
    %37 = arith.mulf %35, %36 : vector<1x256xf32>
    %c1_i32_10 = arith.constant 1 : i32
    %38 = arith.cmpi slt, %arg1, %c1_i32_10 : i32
    %39 = arith.extui %38 : i1 to i32
    %c0_i32_11 = arith.constant 0 : i32
    %40 = arith.cmpi ne, %39, %c0_i32_11 : i32
    scf.if %40 {
      %44 = vector.shape_cast %34 : vector<1x256xf32> to vector<1x256xf32>
      %45 = vector.broadcast %44 : vector<1x256xf32> to vector<2x256xf32>
      %c0_14 = arith.constant 0 : index
      %c0_15 = arith.constant 0 : index
      %c0_16 = arith.constant 0 : index
      %c0_17 = arith.constant 0 : index
      %46 = vector.load %arg3[%c0_14, %c0_15, %c0_16, %c0_17] : memref<1x1x2x256xf32, #tpu.memory_space<vmem>>, vector<1x1x2x256xf32>
      %47 = vector.shape_cast %46 : vector<1x1x2x256xf32> to vector<2x256xf32>
      %48 = vector.shape_cast %45 : vector<2x256xf32> to vector<1x1x2x256xf32>
      tpu.vector_store %arg3[%c0_14, %c0_15, %c0_16, %c0_17], %48 {strides = array<i32>} : memref<1x1x2x256xf32, #tpu.memory_space<vmem>>, vector<1x1x2x256xf32>,
    } else {
    }
    %c1_i32_12 = arith.constant 1 : i32
    %41 = arith.cmpi sge, %arg1, %c1_i32_12 : i32
    %42 = arith.extui %41 : i1 to i32
    %c0_i32_13 = arith.constant 0 : i32
    %43 = arith.cmpi ne, %42, %c0_i32_13 : i32
    scf.if %43 {
      %44 = vector.shape_cast %37 : vector<1x256xf32> to vector<1x256xf32>
      %45 = vector.broadcast %44 : vector<1x256xf32> to vector<2x256xf32>
      %c0_14 = arith.constant 0 : index
      %c0_15 = arith.constant 0 : index
      %c0_16 = arith.constant 0 : index
      %c0_17 = arith.constant 0 : index
      %46 = vector.load %arg3[%c0_14, %c0_15, %c0_16, %c0_17] : memref<1x1x2x256xf32, #tpu.memory_space<vmem>>, vector<1x1x2x256xf32>
      %47 = vector.shape_cast %46 : vector<1x1x2x256xf32> to vector<2x256xf32>
      %48 = vector.shape_cast %45 : vector<2x256xf32> to vector<1x1x2x256xf32>
      tpu.vector_store %arg3[%c0_14, %c0_15, %c0_16, %c0_17], %48 {strides = array<i32>} : memref<1x1x2x256xf32, #tpu.memory_space<vmem>>, vector<1x1x2x256xf32>,
    } else {
    }
    return
  }
  func.func @transform_0(%arg0: i32, %arg1: i32) -> (i32, i32, i32) {
    %c0_i32 = arith.constant 0 : i32
    %c0_i32_0 = arith.constant 0 : i32
    %c0_i32_1 = arith.constant 0 : i32
    return %arg0, %c0_i32, %c0_i32_0 : i32, i32, i32
  }
  func.func @transform_1(%arg0: i32, %arg1: i32) -> (i32, i32, i32, i32) {
    %c0_i32 = arith.constant 0 : i32
    %c0_i32_0 = arith.constant 0 : i32
    %c0_i32_1 = arith.constant 0 : i32
    return %arg0, %arg1, %c0_i32, %c0_i32_0 : i32, i32, i32, i32
  }
}

</mosaic_0001>

<bundles_post_ra>
// kernel: tpu_custom_call.1
= control target key start
LH: loop header
LB: loop body
LE: loop exit
PB: predicated region body
PF: predicated region fallthrough
CT: control target
= control target key end

     0   :  { %6 = vsyncpa [#allocation3], 0  ;;  %s839_s0 = inlined_call_operand.hbm [shape: f32[2,4,256], index: 0, kind: input, shape index: {}]   ;;  %s840_s1 = inlined_call_operand.hbm [shape: f32[2,2,2,256], index: 1, kind: output, shape index: {}]  }
   0x1   :  { %8 = vsyncpa [#allocation3 + $0x1], 0 }
   0x2   :  { %9 = vsyncpa [#allocation4], 0 }
   0x3   :  { %11 = vsyncpa [#allocation4 + $0x1], 0  ;;  %s654_s6 = smov 0   ;;  %s656_s7 = smov 0  }
   0x4   :  { %s658_s8 = smov 0   ;;  %s660_s9 = smov 0  }
   0x5   :  { %s662_s10 = smov 0   ;;  %s664_s11 = smov 0  }
   0x6   :  { %s666_s12 = smov 0   ;;  %s668_s13 = smov 0  }
   0x7   :  { %s670_s14 = smov 0   ;;  %s672_s15 = smov 0  }
   0x8   :  { %s674_s16 = smov 0  }
   0x9 LB: > { %s365_s17 = sadd.s32 4294967295, %s640_s16   ;;  %s366_s18 = sadd.s32 4294967294, %s640_s16   ;;  %s640_s16 = sphi %s674_s16, %s17_s16   ;;  %s636_s15 = sphi %s672_s15, %s860_s15   ;;  %s632_s14 = sphi %s670_s14, %s859_s14   ;;  %s628_s13 = sphi %s668_s13, %s858_s13   ;;  %s624_s12 = sphi %s666_s12, %s857_s12   ;;  %s620_s11 = sphi %s664_s11, %s856_s11   ;;  %s616_s10 = sphi %s662_s10, %s855_s10   ;;  %s612_s9 = sphi %s660_s9, %s854_s9   ;;  %s608_s8 = sphi %s658_s8, %s853_s8   ;;  %s604_s7 = sphi %s656_s7, %s852_s7   ;;  %s600_s6 = sphi %s654_s6, %s851_s6  }
   0xa   : > { %s26_s19 = sadd.s32 1, %s632_s14  ;;  %s29_s20 = sadd.s32 1, %s636_s15 }
   0xb   : > { %p27_p0 = scmp.ge.s32.totalorder %s26_s19, 2  ;;  %s36_s21 = sadd.s32 1, %s620_s11 }
   0xc   : > { %p43_p1 = scmp.ne.s32.totalorder %s620_s11, %s616_s10  ;;  %p44_p2 = scmp.eq.s32.totalorder %s640_s16, 0 }
   0xd   : > { %s862_s19 = smov (%p27_p0, %s26_s19), 0  ;;  %s864_s20 = smov (!%p27_p0, %s29_s20), %s636_s15 }
   0xe   : > { %843 = sst [smem:[#allocation8_spill]] %s862_s19  ;;  %p718_p3 = por %p44_p2, %p43_p1 }
   0xf   : > { %p49_p4 = scmp.ne.s32.totalorder %s616_s10, %s612_s9  ;;  %p31_p5 = scmp.ge.s32.totalorder %s864_s20, 2 }
  0x10   : > { %p50_p6 = scmp.eq.s32.totalorder %s365_s17, 0  ;;  %s60_s23 = ssub.s32 %s632_s14, %s862_s19 }
  0x11   : > { %s64_s24 = sadd.s32 1, %s608_s8  ;;  %s866_s20 = smov (%p31_p5, %s864_s20), 0 }
  0x12   : > { %845 = sst [smem:[#allocation9_spill]] %s866_s20  ;;  %p728_p7 = por %p50_p6, %p49_p4 }
  0x13   : > { %p74_p8 = scmp.ne.s32.totalorder %s608_s8, %s604_s7  ;;  %s33_s26 = ssub.s32 %s636_s15, %s866_s20 }
  0x14   : > { %p75_p9 = scmp.eq.s32.totalorder %s365_s17, 3  ;;  %p34_p10 = scmp.eq.s32.totalorder %s33_s26, 0 }
  0x15   : > { %s61_s27 = sor.u32 %s60_s23, %s33_s26  ;;  %p80_p13 = scmp.ne.s32.totalorder %s604_s7, %s600_s6 }
  0x16   : > { %p62_p11 = scmp.eq.s32.totalorder %s61_s27, 0  ;;  %p736_p12 = por %p75_p9, %p74_p8 }
  0x17   : > { %s741_s29 = scalar_select %p34_p10, %s620_s11, %s36_s21  }
  0x18   : > { %s744_s30 = scalar_select %p62_p11, %s608_s8, %s64_s24  }
  0x19   : > { %p81_p0 = scmp.eq.s32.totalorder %s366_s18, 3  ;;  %p396_p1 = scmp.lt.s32.totalorder %s640_s16, 4 }
  0x1a   : > { %s101_s3 = sand.u32 1, %s620_s11   ;;  %s383_s5 = sshll.u32 %s636_s15, 3 }
  0x1b   : > { %p749_p2 = por %p81_p0, %p80_p13  ;;  %s369_s4 = sshll.u32 %s101_s3, 3 }
  0x1c   : > { %s110_s23 = scalar_lea.hbm %s839_s0, %s383_s5  ;;  %s105_s21 = scalar_lea.vmem [#allocation2], %s369_s4 }
  0x1d   : > { %s114_s26 = sshll.u32 %s105_s21, 4  ;;  %s112_s27 = sshll.u32 %s110_s23, 4  ;;  %s115_s26 = int_to_ptr.vmem [resolvable:$true] %s114_s26  ;;  %s113_s27 = int_to_ptr.hbm [resolvable:$true] %s112_s27 }
  0x1e   : > { %p389_p4 = pnand %p396_p1, %p718_p3  ;;  %p372_p5 = scmp.ge.s32.totalorder %s640_s16, 1 }
  0x1f   : > { %p119_p6 = scmp.lt.s32.totalorder %s640_s16, 5  ;;  %s102_s18 = scalar_lea.sflag [#allocation3], %s101_s3 }
  0x20   : > { %391 = dma.hbm_to_vmem [thread:$0]  (!%p389_p4), %s113_s27, 128, %s115_s26, %s102_s18  }
  0x21   : > { %p120_p8 = pnand %p372_p5, %p119_p6 }
  0x22   : > { %s125_s24 = sand.u32 (!%p120_p8), 1, %s616_s10  }
  0x23   : > { %123 = sbr.rel (%p120_p8) target bundleno = 329 (0x149), region = 24  ;;  %s373_s20 = sshll.u32 (!%p120_p8), %s125_s24, 3 }
  0x24   : > { %s126_s19 = scalar_lea.sflag (!%p120_p8), [#allocation3], %s125_s24  ;;  %s129_s9 = scalar_lea.vmem (!%p120_p8), [#allocation2], %s373_s20 }
  0x28   : > { %591 = dma.done.wait (%p728_p7), %s126_s19, 128  }
  0x29   : > { %593 = vsyncadd (%p728_p7), %s126_s19, 4294967168  ;;  %v149_v0 = vld [vmem:[%s129_s9] sm:$0xff]  ;;  %vm156_vm0 = vcmask 1043456   ;;  %s642_s19 = smov 112   ;;  %s643_s20 = smov 127   ;;  %v171_v17 = vlaneseq }
  0x2a   : > { %151 = vst [vmem:[#allocation1] ss:$2 sm:$0xff] %v149_v0  ;;  %s146_s22 = sand.u32 1, %s604_s7   ;;  %p375_p3 = scmp.ge.s32.totalorder %s624_s12, 1 }
  0x2b   : > { %s772_s25 = sshll.u32 %s146_s22, 2  ;;  %v172_v18 = vand.u32 127, %v171_v17 }
  0x2c   : > { %s148_s3 = scalar_lea.vmem [#allocation5], %s772_s25 }
  0x2d   : > { %v173_v19 = vadd.s32 128, %v172_v18  ;;  %v178_v22 = vand.u32 15, %v172_v18  ;;  %vm215_vm1 = vcmp.lt.s32.totalorder %v172_v18, 112  ;;  %vm206_vm2 = vcmp.lt.s32.totalorder %v172_v18, 127 }
  0x2f   : > { %v185_v23 = vand.u32 15, %v173_v19  ;;  %vm201_vm3 = vcmp.lt.s32.totalorder %v173_v19, 240  ;;  %vm198_vm4 = vcmp.ne.s32.totalorder %v178_v22, 15 }
  0x31   : > { %v152_v1 = vld.sshfl [vmem:[#allocation1] sm:$0xff pattern:$0x75316420]  ;;  %v153_v2 = vld.sshfl [vmem:[#allocation1 + $0x8] sm:$0xff pattern:$0x75316420] }
  0x32   : > { %v157_v3 = vsel %vm156_vm0, %v152_v1, 0.0  ;;  %v164_v4 = vsel %vm156_vm0, %v153_v2, 0.0  ;;  %vm199_vm5 = vcmp.ne.s32.totalorder %v185_v23, 15 }
  0x33   : > { %v158_v5 = vrot.slane %v157_v3, 4  ;;  %v165_v6 = vrot.slane %v164_v4, 4 }
  0x35   : > { %v159_v7 = vadd.f32 %v158_v5, %v157_v3  ;;  %v166_v8 = vadd.f32 %v165_v6, %v164_v4 }
  0x37   : > { %v160_v9 = vrot.slane %v159_v7, 2  ;;  %v167_v10 = vrot.slane %v166_v8, 2 }
  0x39   : > { %v161_v11 = vadd.f32 %v160_v9, %v159_v7  ;;  %v168_v13 = vadd.f32 %v167_v10, %v166_v8 }
  0x3b   : > { %v162_v12 = vrot.slane %v161_v11, 1  ;;  %v169_v15 = vrot.slane %v168_v13, 1 }
  0x3d   : > { %v163_v14 = vadd.f32 %v162_v12, %v161_v11  ;;  %v170_v16 = vadd.f32 %v169_v15, %v168_v13 }
  0x3f   : > { %211 = vrot.lane.b32.xlu1 %v163_v14, %s642_s19  ;;  %202 = vrot.lane.b32.xlu0 %v163_v14, %s643_s20 }
  0x47   : > { %213 = vrot.lane.b32.xlu1 %v170_v16, %s642_s19  ;;  %204 = vrot.lane.b32.xlu0 %v170_v16, %s643_s20 }
  0xb1   : > { %v212_v20 = vpop.permute.xlu1 %211  ;;  %v203_v21 = vpop.permute.xlu0 %202 }
  0xb9   : > { %v214_v24 = vpop.permute.xlu1 %213  ;;  %v205_v25 = vpop.permute.xlu0 %204 }
  0xba   : > { %v216_v26 = vsel %vm215_vm1, %v212_v20, %v214_v24  ;;  %v217_v27 = vsel %vm215_vm1, %v214_v24, %v212_v20  ;;  %v208_v28 = vsel %vm206_vm2, %v205_v25, %v203_v21  ;;  %v207_v29 = vsel %vm206_vm2, %v203_v21, %v205_v25 }
  0xbb   : > { %v219_v30 = vsel %vm201_vm3, %v217_v27, 0.0  ;;  %v209_v31 = vsel %vm198_vm4, %v207_v29, 0.0  ;;  %v210_v32 = vsel %vm199_vm5, %v208_v28, 0.0 }
  0xbc   : > { %220 = vrot.lane.b32.xlu2 %v209_v31, %s642_s19  ;;  %v232_v33 = vsub.f32 %v209_v31, %v216_v26  ;;  %v233_v34 = vsub.f32 %v210_v32, %v219_v30 }
  0xbe   : > { %v234_v35 = vmul.f32 0.5, %v232_v33  ;;  %v235_v36 = vmul.f32 0.5, %v233_v34 }
  0xc4   : > { %222 = vrot.lane.b32.xlu2 %v210_v32, %s642_s19 }
 0x116   : > { %v221_v37 = vpop.permute.xlu2 %220 }
 0x11e   : > { %v223_v38 = vpop.permute.xlu2 %222 }
 0x11f   : > { %v224_v39 = vsel %vm215_vm1, %v221_v37, %v223_v38  ;;  %v225_v40 = vsel %vm215_vm1, %v223_v38, %v221_v37  ;;  %239 = sbr.rel (%p375_p3) target bundleno = 299 (0x12b), region = 32 }
 0x120   : > { %v227_v41 = vsel %vm201_vm3, %v225_v40, 0.0  ;;  %v228_v42 = vsub.f32 %v163_v14, %v224_v39 }
 0x121   : > { %v229_v43 = vsub.f32 %v170_v16, %v227_v41 }
 0x122   : > { %v230_v44 = vmul.f32 0.5, %v228_v42 }
 0x123   : > { %v231_v45 = vmul.f32 0.5, %v229_v43 }
 0x124   : > { %v240_v46 = vperm.slane %v230_v44, 0  ;;  %vm245_vm6 = vcmask 1041408  }
 0x125   : > { %v241_v47 = vperm.slane %v231_v45, 0 }
 0x127   : > { %v244_v48 = vrot.slane %v241_v47, 6 }
 0x129   : > { %v246_v49 = vsel %vm245_vm6, %v240_v46, %v244_v48 }
 0x12a   : > { %248 = vst [vmem:[%s148_s3] sm:$0xf] %v246_v49 }
 0x12b PF: > { %p376_p7 = scmp.lt.s32.totalorder %s624_s12, 1 }
 0x12d   : > { %252 = sbr.rel (%p376_p7) target bundleno = 312 (0x138), region = 36 }
 0x132   : > { %v253_v50 = vperm.slane %v234_v35, 0  ;;  %v254_v51 = vperm.slane %v235_v36, 0  ;;  %vm258_vm7 = vcmask 1041408  }
 0x134   : > { %v257_v52 = vrot.slane %v254_v51, 6 }
 0x136   : > { %v259_v53 = vsel %vm258_vm7, %v253_v50, %v257_v52 }
 0x137   : > { %261 = vst [vmem:[%s148_s3] sm:$0xf] %v259_v53 }
 0x138 PF: > { %s378_s4 = sshll.u32 %s624_s12, 1  ;;  %s379_s5 = sshll.u32 %s628_s13, 2 }
 0x139   : > { %s278_s17 = sshll.u32 %s148_s3, 4  ;;  %s274_s23 = sadd.s32 %s379_s5, %s378_s4  ;;  %s279_s17 = int_to_ptr.vmem [resolvable:$true] %s278_s17 }
 0x13a   : > { %s380_s21 = sshll.u32 %s274_s23, 1  ;;  %s263_s9 = scalar_lea.sflag [#allocation4], %s146_s22 }
 0x13b   : > { %s276_s18 = scalar_lea.hbm %s840_s1, %s380_s21  ;;  %s538_s25 = scalar_lea.hbm %s840_s1, 16 }
 0x13c   : > { %s280_s24 = sshll.u32 %s276_s18, 4  ;;  %s281_s24 = int_to_ptr.hbm [resolvable:$true] %s280_s24 }
 0x13d   : > { %s532_s19 = sshra.s32 %s281_s24, 4  ;;  %s533_s19 = int_to_ptr.hbm [resolvable:$true] %s532_s19 }
 0x13e   : > { %s534_s20 = scalar_lea.hbm %s533_s19, 4  ;;  %p539_p13 = scmp.lt.s32.totalorder %s533_s19, %s840_s1 }
 0x13f   : > { %p535_p9 = scmp.ne.s32.totalorder %s533_s19, %s534_s20  ;;  %p540_p0 = scmp.lt.s32.totalorder %s538_s25, %s534_s20 }
 0x141   : > { %p536_p10 = pnand %p535_p9, %p736_p12  ;;  %p541_p1 = por %p540_p0, %p539_p13 }
 0x143   : > { %p537_p11 = pneg %p536_p10 }
 0x145   : > { %p542_p4 = pnand %p541_p1, %p537_p11 }
 0x147   : > { %545 = shalt.err (!%p542_p4)
}
 0x148   : > { %386 = dma.vmem_to_hbm [thread:$0]  (%p736_p12), %s279_s17, 64, %s281_s24, %s263_s9  }
 0x149 PF: > { %p397_p5 = scmp.ge.s32.totalorder %s640_s16, 2  ;;  %s292_s22 = sand.u32 1, %s600_s6  }
 0x14a   : > { %s293_s5 = scalar_lea.sflag [#allocation4], %s292_s22 }
 0x14b   : > { %p393_p6 = pnand %p397_p5, %p749_p2 }
 0x14d   : > { %p394_p8 = pneg %p393_p6 }
 0x14f   : > { %595 = dma.done.wait (%p394_p8), %s293_s5, 64  }
 0x150   : > { %597 = vsyncadd (%p394_p8), %s293_s5, 4294967232  ;;  %s17_s16 = sadd.s32 1, %s640_s16   ;;  %s849_s28 = sld [smem:[#allocation8_spill]] }
 0x151   : > { %p14_p3 = scmp.ge.s32.totalorder %s17_s16, 6   ;;  %s850_s17 = sld [smem:[#allocation9_spill]] }
 0x152   : > { %s851_s6 = smov %s604_s7  ;;  %s852_s7 = smov %s608_s8 }
 0x153   : > { %s853_s8 = smov %s744_s30  ;;  %s854_s9 = smov %s616_s10 }
 0x154   : > { %s855_s10 = smov %s620_s11  ;;  %s856_s11 = smov %s741_s29 }
 0x155   : > { %s857_s12 = smov %s632_s14  ;;  %s858_s13 = smov %s636_s15 }
 0x156   : > { %s859_s14 = smov %s849_s28  ;;  %16 = sbr.rel (!%p14_p3) target bundleno = 9 (0x9), region = 77 }
 0x157   : > { %s860_s15 = smov %s850_s17 }
 0x15b   :  { %299 = vsyncpa [#allocation3], 1 }
 0x15c   :  { %301 = vsyncpa [#allocation3 + $0x1], 1 }
 0x15d   :  { %302 = vsyncpa [#allocation4], 1 }
 0x15e   :  { %304 = vsyncpa [#allocation4 + $0x1], 1 }

</bundles_post_ra>
